<compile_context>
chip_gen: v7x
topology: tpu7x:2x2x1
jax: 0.10.0
libtpu: 0.0.40
codegen_flags: <defaults>
</compile_context>

<pallas_src>
import jax
import jax.numpy as jnp
from jax.experimental import pallas as pl
from jax.experimental.pallas import tpu as pltpu

LANE = 128


def _round_up(x, m):
    return ((x + m - 1) // m) * m


def bottom_level_kernel(tab_ref, vis_ref, lan_ref,
                        wt_ref, bt_ref,
                        wv_ref, bv_ref,
                        wl_ref, bl_ref,
                        tab_out_ref, vis_out_ref, lan_out_ref):
    """One batch tile of the three bottom-level encoders.

    Matmul operands are bf16 (MXU-native), accumulation is f32 via
    preferred_element_type; bias add + ReLU are f32 on the VPU. The language
    mean-pool is already folded into wl_ref (lan arrives flattened [bb, S*E]).
    Output last dim is padded to 128 lanes -> unmasked, lane-dense stores.
    """
    t = jnp.dot(tab_ref[...], wt_ref[...], preferred_element_type=jnp.float32)
    v = jnp.dot(vis_ref[...], wv_ref[...], preferred_element_type=jnp.float32)
    l = jnp.dot(lan_ref[...], wl_ref[...], preferred_element_type=jnp.float32)

    tab_out_ref[...] = jnp.maximum(t + bt_ref[...], 0.0).astype(tab_out_ref.dtype)
    vis_out_ref[...] = jnp.maximum(v + bv_ref[...], 0.0).astype(vis_out_ref.dtype)
    lan_out_ref[...] = jnp.maximum(l + bl_ref[...], 0.0).astype(lan_out_ref.dtype)


def bottom_level_forward(tab_data, vis_data, lan_data, params, *, block_b=128):
    B = tab_data.shape[0]
    S = lan_data.shape[1]
    H = params["Wt"].shape[-1]                     # d_model

    # ---- host-side layout glue (no kernel compute hoisted here) -------------
    vis_flat = vis_data.reshape(B, -1)             # NCHW -> [B, C*H*W]
    lan_flat = lan_data.reshape(B, -1)             # [B, S, E] -> [B, S*E]

    # Batch padding / tile selection (bf16-friendly sublane multiple of 16).
    B_pad = _round_up(B, 16)
    bb = min(block_b, B_pad)
    B_pad = _round_up(B_pad, bb)

    def pad_batch(x):
        return jnp.pad(x, ((0, B_pad - x.shape[0]), (0, 0)))

    # bf16 matmul operands; f32 accumulation happens in-kernel.
    tab_p = pad_batch(tab_data).astype(jnp.bfloat16)
    vis_p = pad_batch(vis_flat).astype(jnp.bfloat16)
    lan_p = pad_batch(lan_flat).astype(jnp.bfloat16)

    # Pad output dim H -> multiple of 128 with zero columns (lane-dense stores)
    # and fold the sequence mean into Wl:  mean_s(lan) @ Wl == lan_flat @ tile(Wl/S).
    H_pad = _round_up(H, LANE)

    def pad_n(w):
        return jnp.pad(w, ((0, 0), (0, H_pad - w.shape[-1])))

    wt = pad_n(params["Wt"]).astype(jnp.bfloat16)                        # [Dt,  Hp]
    wv = pad_n(params["Wv"]).astype(jnp.bfloat16)                        # [Dv,  Hp]
    wl = pad_n(jnp.tile(params["Wl"] / S, (S, 1))).astype(jnp.bfloat16)  # [S*E, Hp]
    bt = pad_n(params["bt"]).astype(jnp.float32)                         # [1, Hp]
    bv = pad_n(params["bv"]).astype(jnp.float32)
    bl = pad_n(params["bl"]).astype(jnp.float32)

    grid = (B_pad // bb,)

    def act_spec(d):
        return pl.BlockSpec((bb, d), lambda i: (i, 0))

    def weight_spec(k):                            # resident across the grid
        return pl.BlockSpec((k, H_pad), lambda i: (0, 0))

    bias_spec = pl.BlockSpec((1, H_pad), lambda i: (0, 0))
    out_spec = pl.BlockSpec((bb, H_pad), lambda i: (i, 0))
    out_shape = jax.ShapeDtypeStruct((B_pad, H_pad), jnp.float32)

    tab_o, vis_o, lan_o = pl.pallas_call(
        bottom_level_kernel,
        grid=grid,
        in_specs=[
            act_spec(tab_p.shape[-1]),
            act_spec(vis_p.shape[-1]),
            act_spec(lan_p.shape[-1]),
            weight_spec(wt.shape[0]), bias_spec,
            weight_spec(wv.shape[0]), bias_spec,
            weight_spec(wl.shape[0]), bias_spec,
        ],
        out_specs=(out_spec, out_spec, out_spec),
        out_shape=(out_shape, out_shape, out_shape),
        compiler_params=pltpu.CompilerParams(
            dimension_semantics=("parallel",)),
    )(tab_p, vis_p, lan_p, wt, bt, wv, bv, wl, bl)

    # Strip batch + lane padding; return the module's (tab, vis, lan) tuple.
    return tab_o[:B, :H], vis_o[:B, :H], lan_o[:B, :H]


def bottom_level_reference(tab_data, vis_data, lan_data, params):
    B = tab_data.shape[0]
    vis_flat = vis_data.reshape(B, -1)
    lan_pool = jnp.mean(lan_data, axis=1)
    t = jax.nn.relu(tab_data @ params["Wt"] + params["bt"])
    v = jax.nn.relu(vis_flat @ params["Wv"] + params["bv"])
    l = jax.nn.relu(lan_pool @ params["Wl"] + params["bl"])
    return t, v, l


if __name__ == "__main__":
    # Small deterministic shapes consistent with the forward signature.
    B = 2                    # batch
    D_TAB = 16               # tabular features
    C, HH, WW = 4, 16, 16    # vision NCHW
    S, E = 8, 32             # language: seq len, embed dim
    H = 32                   # d_model (bottom-level output dim)

    key = jax.random.PRNGKey(0)
    ks = jax.random.split(key, 9)

    tab_data = jax.random.normal(ks[0], (B, D_TAB), dtype=jnp.float32)
    vis_data = jax.random.normal(ks[1], (B, C, HH, WW), dtype=jnp.float32)
    lan_data = jax.random.normal(ks[2], (B, S, E), dtype=jnp.float32)

    D_VIS = C * HH * WW
    params = {
        "Wt": 0.05 * jax.random.normal(ks[3], (D_TAB, H), dtype=jnp.float32),
        "bt": 0.01 * jax.random.normal(ks[4], (1, H), dtype=jnp.float32),
        "Wv": 0.05 * jax.random.normal(ks[5], (D_VIS, H), dtype=jnp.float32),
        "bv": 0.01 * jax.random.normal(ks[6], (1, H), dtype=jnp.float32),
        "Wl": 0.05 * jax.random.normal(ks[7], (E, H), dtype=jnp.float32),
        "bl": 0.01 * jax.random.normal(ks[8], (1, H), dtype=jnp.float32),
    }

    tab_out, vis_out, lan_out = bottom_level_forward(tab_data, vis_data, lan_data, params)
    jax.block_until_ready((tab_out, vis_out, lan_out))

    tab_ref, vis_ref, lan_ref = bottom_level_reference(tab_data, vis_data, lan_data, params)

    assert tab_out.shape == (B, H) and vis_out.shape == (B, H) and lan_out.shape == (B, H)
    # bf16 matmul operands vs f32 reference -> loosened tolerance (per review).
    assert jnp.allclose(tab_out, tab_ref, atol=5e-2, rtol=5e-2), "tab mismatch"
    assert jnp.allclose(vis_out, vis_ref, atol=5e-2, rtol=5e-2), "vis mismatch"
    assert jnp.allclose(lan_out, lan_ref, atol=5e-2, rtol=5e-2), "lan mismatch"

    print("KERNEL_OK")
</pallas_src>

<mosaic_0001>
module attributes {stable_mosaic.version = 11 : i64} {
  func.func @bottom_level_kernel(%arg0: i32, %arg1: memref<16x16xbf16, #tpu.memory_space<vmem>>, %arg2: memref<16x1024xbf16, #tpu.memory_space<vmem>>, %arg3: memref<16x256xbf16, #tpu.memory_space<vmem>>, %arg4: memref<16x128xbf16, #tpu.memory_space<vmem>>, %arg5: memref<1x128xf32, #tpu.memory_space<vmem>>, %arg6: memref<1024x128xbf16, #tpu.memory_space<vmem>>, %arg7: memref<1x128xf32, #tpu.memory_space<vmem>>, %arg8: memref<256x128xbf16, #tpu.memory_space<vmem>>, %arg9: memref<1x128xf32, #tpu.memory_space<vmem>>, %arg10: memref<16x128xf32, #tpu.memory_space<vmem>>, %arg11: memref<16x128xf32, #tpu.memory_space<vmem>>, %arg12: memref<16x128xf32, #tpu.memory_space<vmem>>) attributes {dimension_semantics = [#tpu.dimension_semantics<parallel>], iteration_bounds = array<i64: 1>, scalar_prefetch = 0 : i64, scratch_operands = 0 : i64, tpu.core_type = #tpu.core_type<tc>, window_params = [{transform_indices = @transform_0, window_bounds = array<i64: 16, 16>}, {transform_indices = @transform_1, window_bounds = array<i64: 16, 1024>}, {transform_indices = @transform_2, window_bounds = array<i64: 16, 256>}, {pipeline_mode = #tpu.pipeline_mode<synchronous>, transform_indices = @transform_3, window_bounds = array<i64: 16, 128>}, {pipeline_mode = #tpu.pipeline_mode<synchronous>, transform_indices = @transform_4, window_bounds = array<i64: 1, 128>}, {pipeline_mode = #tpu.pipeline_mode<synchronous>, transform_indices = @transform_5, window_bounds = array<i64: 1024, 128>}, {pipeline_mode = #tpu.pipeline_mode<synchronous>, transform_indices = @transform_6, window_bounds = array<i64: 1, 128>}, {pipeline_mode = #tpu.pipeline_mode<synchronous>, transform_indices = @transform_7, window_bounds = array<i64: 256, 128>}, {pipeline_mode = #tpu.pipeline_mode<synchronous>, transform_indices = @transform_8, window_bounds = array<i64: 1, 128>}, {transform_indices = @transform_9, window_bounds = array<i64: 16, 128>}, {transform_indices = @transform_10, window_bounds = array<i64: 16, 128>}, {transform_indices = @transform_11, window_bounds = array<i64: 16, 128>}]} {
    %c0 = arith.constant 0 : index
    %c0_0 = arith.constant 0 : index
    %0 = vector.load %arg1[%c0, %c0_0] : memref<16x16xbf16, #tpu.memory_space<vmem>>, vector<16x16xbf16>
    %c0_1 = arith.constant 0 : index
    %c0_2 = arith.constant 0 : index
    %1 = vector.load %arg4[%c0_1, %c0_2] : memref<16x128xbf16, #tpu.memory_space<vmem>>, vector<16x128xbf16>
    %cst = arith.constant dense<0.000000e+00> : vector<16x128xf32>
    %2 = tpu.matmul %0, %1, %cst {dimension_numbers = #tpu.dot_dimension_numbers<[1], [0], [0], [1], [0, 0, 1, 1], [], []>} : vector<16x16xbf16>, vector<16x128xbf16>, vector<16x128xf32> -> vector<16x128xf32>
    %c0_3 = arith.constant 0 : index
    %c0_4 = arith.constant 0 : index
    %3 = vector.load %arg2[%c0_3, %c0_4] : memref<16x1024xbf16, #tpu.memory_space<vmem>>, vector<16x1024xbf16>
    %c0_5 = arith.constant 0 : index
    %c0_6 = arith.constant 0 : index
    %4 = vector.load %arg6[%c0_5, %c0_6] : memref<1024x128xbf16, #tpu.memory_space<vmem>>, vector<1024x128xbf16>
    %cst_7 = arith.constant dense<0.000000e+00> : vector<16x128xf32>
    %5 = tpu.matmul %3, %4, %cst_7 {dimension_numbers = #tpu.dot_dimension_numbers<[1], [0], [0], [1], [0, 0, 1, 1], [], []>} : vector<16x1024xbf16>, vector<1024x128xbf16>, vector<16x128xf32> -> vector<16x128xf32>
    %c0_8 = arith.constant 0 : index
    %c0_9 = arith.constant 0 : index
    %6 = vector.load %arg3[%c0_8, %c0_9] : memref<16x256xbf16, #tpu.memory_space<vmem>>, vector<16x256xbf16>
    %c0_10 = arith.constant 0 : index
    %c0_11 = arith.constant 0 : index
    %7 = vector.load %arg8[%c0_10, %c0_11] : memref<256x128xbf16, #tpu.memory_space<vmem>>, vector<256x128xbf16>
    %cst_12 = arith.constant dense<0.000000e+00> : vector<16x128xf32>
    %8 = tpu.matmul %6, %7, %cst_12 {dimension_numbers = #tpu.dot_dimension_numbers<[1], [0], [0], [1], [0, 0, 1, 1], [], []>} : vector<16x256xbf16>, vector<256x128xbf16>, vector<16x128xf32> -> vector<16x128xf32>
    %c0_13 = arith.constant 0 : index
    %c0_14 = arith.constant 0 : index
    %9 = vector.load %arg5[%c0_13, %c0_14] : memref<1x128xf32, #tpu.memory_space<vmem>>, vector<1x128xf32>
    %10 = vector.broadcast %9 : vector<1x128xf32> to vector<16x128xf32>
    %11 = arith.addf %2, %10 : vector<16x128xf32>
    %cst_15 = arith.constant 0.000000e+00 : f32
    %12 = vector.broadcast %cst_15 : f32 to vector<16x128xf32>
    %13 = arith.maximumf %11, %12 : vector<16x128xf32>
    %c0_16 = arith.constant 0 : index
    %c0_17 = arith.constant 0 : index
    %14 = vector.load %arg10[%c0_16, %c0_17] : memref<16x128xf32, #tpu.memory_space<vmem>>, vector<16x128xf32>
    tpu.vector_store %arg10[%c0_16, %c0_17], %13 {strides = array<i32>} : memref<16x128xf32, #tpu.memory_space<vmem>>, vector<16x128xf32>,
    %c0_18 = arith.constant 0 : index
    %c0_19 = arith.constant 0 : index
    %15 = vector.load %arg7[%c0_18, %c0_19] : memref<1x128xf32, #tpu.memory_space<vmem>>, vector<1x128xf32>
    %16 = vector.broadcast %15 : vector<1x128xf32> to vector<16x128xf32>
    %17 = arith.addf %5, %16 : vector<16x128xf32>
    %cst_20 = arith.constant 0.000000e+00 : f32
    %18 = vector.broadcast %cst_20 : f32 to vector<16x128xf32>
    %19 = arith.maximumf %17, %18 : vector<16x128xf32>
    %c0_21 = arith.constant 0 : index
    %c0_22 = arith.constant 0 : index
    %20 = vector.load %arg11[%c0_21, %c0_22] : memref<16x128xf32, #tpu.memory_space<vmem>>, vector<16x128xf32>
    tpu.vector_store %arg11[%c0_21, %c0_22], %19 {strides = array<i32>} : memref<16x128xf32, #tpu.memory_space<vmem>>, vector<16x128xf32>,
    %c0_23 = arith.constant 0 : index
    %c0_24 = arith.constant 0 : index
    %21 = vector.load %arg9[%c0_23, %c0_24] : memref<1x128xf32, #tpu.memory_space<vmem>>, vector<1x128xf32>
    %22 = vector.broadcast %21 : vector<1x128xf32> to vector<16x128xf32>
    %23 = arith.addf %8, %22 : vector<16x128xf32>
    %cst_25 = arith.constant 0.000000e+00 : f32
    %24 = vector.broadcast %cst_25 : f32 to vector<16x128xf32>
    %25 = arith.maximumf %23, %24 : vector<16x128xf32>
    %c0_26 = arith.constant 0 : index
    %c0_27 = arith.constant 0 : index
    %26 = vector.load %arg12[%c0_26, %c0_27] : memref<16x128xf32, #tpu.memory_space<vmem>>, vector<16x128xf32>
    tpu.vector_store %arg12[%c0_26, %c0_27], %25 {strides = array<i32>} : memref<16x128xf32, #tpu.memory_space<vmem>>, vector<16x128xf32>,
    return
  }
  func.func @transform_0(%arg0: i32) -> (i32, i32) {
    %c0_i32 = arith.constant 0 : i32
    %c0_i32_0 = arith.constant 0 : i32
    return %arg0, %c0_i32 : i32, i32
  }
  func.func @transform_1(%arg0: i32) -> (i32, i32) {
    %c0_i32 = arith.constant 0 : i32
    %c0_i32_0 = arith.constant 0 : i32
    return %arg0, %c0_i32 : i32, i32
  }
  func.func @transform_2(%arg0: i32) -> (i32, i32) {
    %c0_i32 = arith.constant 0 : i32
    %c0_i32_0 = arith.constant 0 : i32
    return %arg0, %c0_i32 : i32, i32
  }
  func.func @transform_3(%arg0: i32) -> (i32, i32) {
    %c0_i32 = arith.constant 0 : i32
    %c0_i32_0 = arith.constant 0 : i32
    %c0_i32_1 = arith.constant 0 : i32
    return %c0_i32, %c0_i32_0 : i32, i32
  }
  func.func @transform_4(%arg0: i32) -> (i32, i32) {
    %c0_i32 = arith.constant 0 : i32
    %c0_i32_0 = arith.constant 0 : i32
    %c0_i32_1 = arith.constant 0 : i32
    return %c0_i32, %c0_i32_0 : i32, i32
  }
  func.func @transform_5(%arg0: i32) -> (i32, i32) {
    %c0_i32 = arith.constant 0 : i32
    %c0_i32_0 = arith.constant 0 : i32
    %c0_i32_1 = arith.constant 0 : i32
    return %c0_i32, %c0_i32_0 : i32, i32
  }
  func.func @transform_6(%arg0: i32) -> (i32, i32) {
    %c0_i32 = arith.constant 0 : i32
    %c0_i32_0 = arith.constant 0 : i32
    %c0_i32_1 = arith.constant 0 : i32
    return %c0_i32, %c0_i32_0 : i32, i32
  }
  func.func @transform_7(%arg0: i32) -> (i32, i32) {
    %c0_i32 = arith.constant 0 : i32
    %c0_i32_0 = arith.constant 0 : i32
    %c0_i32_1 = arith.constant 0 : i32
    return %c0_i32, %c0_i32_0 : i32, i32
  }
  func.func @transform_8(%arg0: i32) -> (i32, i32) {
    %c0_i32 = arith.constant 0 : i32
    %c0_i32_0 = arith.constant 0 : i32
    %c0_i32_1 = arith.constant 0 : i32
    return %c0_i32, %c0_i32_0 : i32, i32
  }
  func.func @transform_9(%arg0: i32) -> (i32, i32) {
    %c0_i32 = arith.constant 0 : i32
    %c0_i32_0 = arith.constant 0 : i32
    return %arg0, %c0_i32 : i32, i32
  }
  func.func @transform_10(%arg0: i32) -> (i32, i32) {
    %c0_i32 = arith.constant 0 : i32
    %c0_i32_0 = arith.constant 0 : i32
    return %arg0, %c0_i32 : i32, i32
  }
  func.func @transform_11(%arg0: i32) -> (i32, i32) {
    %c0_i32 = arith.constant 0 : i32
    %c0_i32_0 = arith.constant 0 : i32
    return %arg0, %c0_i32 : i32, i32
  }
}

</mosaic_0001>

<bundles_post_ra>
// kernel: tpu_custom_call.1
= control target key start
LH: loop header
LB: loop body
LE: loop exit
PB: predicated region body
PF: predicated region fallthrough
CT: control target
= control target key end

     0   :  { %17 = vsyncpa [#allocation3], 0  ;;  %s1860_s0 = inlined_call_operand.hbm [shape: bf16[16,16], index: 0, kind: input, shape index: {}]   ;;  %s1861_s1 = inlined_call_operand.hbm [shape: bf16[16,1024], index: 1, kind: input, shape index: {}]   ;;  %s1862_s2 = inlined_call_operand.hbm [shape: bf16[16,256], index: 2, kind: input, shape index: {}]   ;;  %s1863_s3 = inlined_call_operand.vmem [shape: bf16[16,128], index: 3, kind: input, shape index: {}]   ;;  %s1864_s4 = inlined_call_operand.vmem [shape: f32[1,128], index: 4, kind: input, shape index: {}]   ;;  %s1865_s5 = inlined_call_operand.hbm [shape: bf16[1024,128], index: 5, kind: input, shape index: {}]   ;;  %s1866_s6 = inlined_call_operand.vmem [shape: f32[1,128], index: 6, kind: input, shape index: {}]   ;;  %s1867_s7 = inlined_call_operand.hbm [shape: bf16[256,128], index: 7, kind: input, shape index: {}]   ;;  %s1868_s8 = inlined_call_operand.vmem [shape: f32[1,128], index: 8, kind: input, shape index: {}]   ;;  %s1869_s9 = inlined_call_operand.hbm [shape: f32[16,128], index: 9, kind: output, shape index: {0}]   ;;  %s1870_s10 = inlined_call_operand.hbm [shape: f32[16,128], index: 10, kind: output, shape index: {1}]   ;;  %s1871_s11 = inlined_call_operand.hbm [shape: f32[16,128], index: 11, kind: output, shape index: {2}]  }
   0x1   :  { %18 = vsyncpa [#allocation6], 0 }
   0x2   :  { %19 = vsyncpa [#allocation9], 0 }
   0x3   :  { %20 = vsyncpa [#allocation4], 0 }
   0x4   :  { %21 = vsyncpa [#allocation13], 0  ;;  %s1655_s17 = smov [#allocation5]   ;;  %s1469_s21 = scalar_lea.hbm %s1861_s1, 1024 }
   0x5   :  { %s39_s18 = sshll.u32 %s1655_s17, 4  ;;  %p1470_p0 = scmp.ne.s32.totalorder %s1861_s1, %s1469_s21  ;;  %s40_s18 = int_to_ptr.vmem [resolvable:$true] %s39_s18 }
   0x6   :  { %p1473_p1 = scmp.lt.u32.totalorder %s1469_s21, %s1861_s1 }
   0x8   :  { %p1475_p2 = pnand %p1473_p1, %p1470_p0 }
   0xa   :  { %1478 = shalt.err (!%p1475_p2)
}
   0xb   :  { %s1479_s26 = scalar_lea.vmem %s40_s18, 1024  ;;  %p1484_p4 = scmp.lt.s32.totalorder %s40_s18, %s40_s18 }
   0xc   :  { %p1480_p3 = scmp.ne.s32.totalorder %s40_s18, %s1479_s26  ;;  %p1485_p5 = scmp.lt.s32.totalorder %s1479_s26, %s1479_s26 }
   0xe   :  { %p1486_p6 = por %p1485_p5, %p1484_p4 }
  0x10   :  { %p1487_p7 = pnand %p1486_p6, %p1480_p3 }
  0x12   :  { %1490 = shalt.err (!%p1487_p7)
}
  0x13   :  { %s1656_s27 = smov 512   ;;  %s1657_s28 = smov 32  }
  0x14   :  { %45 = dma.hbm_to_vmem [thread:$0]  %s1861_s1, 1024, %s40_s18, [#allocation6], %s1656_s27, %s1656_s27, %s1657_s28  }
  0x15   :  { %s1658_s12 = smov [#allocation8]   ;;  %s1659_s14 = smov [#allocation2]  }
  0x16   :  { %s67_s13 = sshll.u32 %s1658_s12, 4  ;;  %s27_s15 = sshll.u32 %s1659_s14, 4  ;;  %s68_s13 = int_to_ptr.vmem [resolvable:$true] %s67_s13  ;;  %s28_s15 = int_to_ptr.vmem [resolvable:$true] %s27_s15 }
  0x17   :  { %s1491_s19 = scalar_lea.hbm %s1865_s5, 8192 }
  0x18   :  { %p1492_p8 = scmp.ne.s32.totalorder %s1865_s5, %s1491_s19  ;;  %p1495_p9 = scmp.lt.u32.totalorder %s1491_s19, %s1865_s5 }
  0x1a   :  { %p1497_p10 = pnand %p1495_p9, %p1492_p8 }
  0x1c   :  { %1500 = shalt.err (!%p1497_p10)
}
  0x1d   :  { %s1501_s1 = scalar_lea.vmem %s68_s13, 8192  ;;  %p1506_p12 = scmp.lt.s32.totalorder %s68_s13, %s68_s13 }
  0x1e   :  { %p1502_p11 = scmp.ne.s32.totalorder %s68_s13, %s1501_s1  ;;  %p1507_p13 = scmp.lt.s32.totalorder %s1501_s1, %s1501_s1 }
  0x20   :  { %p1508_p0 = por %p1507_p13, %p1506_p12 }
  0x22   :  { %p1509_p1 = pnand %p1508_p0, %p1502_p11 }
  0x24   :  { %1512 = shalt.err (!%p1509_p1)
}
  0x25   :  { %s1660_s18 = smov 64   ;;  %s1661_s24 = smov 4  }
  0x26   :  { %73 = dma.hbm_to_vmem [thread:$0]  %s1865_s5, 8192, %s68_s13, [#allocation9], %s1660_s18, %s1660_s18, %s1661_s24  }
  0x27   :  { %s1513_s29 = scalar_lea.hbm %s1860_s0, 128 }
  0x28   :  { %p1514_p2 = scmp.ne.s32.totalorder %s1860_s0, %s1513_s29  ;;  %p1517_p3 = scmp.lt.u32.totalorder %s1513_s29, %s1860_s0 }
  0x2a   :  { %p1519_p4 = pnand %p1517_p3, %p1514_p2 }
  0x2c   :  { %1522 = shalt.err (!%p1519_p4)
}
  0x2d   :  { %s1523_s17 = scalar_lea.vmem %s28_s15, 128  ;;  %p1528_p6 = scmp.lt.s32.totalorder %s28_s15, %s28_s15 }
  0x2e   :  { %p1524_p5 = scmp.ne.s32.totalorder %s28_s15, %s1523_s17  ;;  %p1529_p7 = scmp.lt.s32.totalorder %s1523_s17, %s1523_s17 }
  0x30   :  { %p1530_p8 = por %p1529_p7, %p1528_p6 }
  0x32   :  { %p1531_p9 = pnand %p1530_p8, %p1524_p5 }
  0x34   :  { %1534 = shalt.err (!%p1531_p9)
}
  0x35   :  { %33 = dma.hbm_to_vmem [thread:$0]  %s1860_s0, 128, %s28_s15, [#allocation3], %s1660_s18, %s1660_s18, %s1661_s24  }
  0x36   :  { %s1662_s19 = smov [#allocation7]   ;;  %s1535_s23 = scalar_lea.hbm %s1862_s2, 256 }
  0x37   :  { %s51_s20 = sshll.u32 %s1662_s19, 4  ;;  %p1536_p10 = scmp.ne.s32.totalorder %s1862_s2, %s1535_s23  ;;  %s52_s20 = int_to_ptr.vmem [resolvable:$true] %s51_s20 }
  0x38   :  { %p1539_p11 = scmp.lt.u32.totalorder %s1535_s23, %s1862_s2 }
  0x3a   :  { %p1541_p12 = pnand %p1539_p11, %p1536_p10 }
  0x3c   :  { %1544 = shalt.err (!%p1541_p12)
}
  0x3d   :  { %s1545_s28 = scalar_lea.vmem %s52_s20, 256  ;;  %p1550_p0 = scmp.lt.s32.totalorder %s52_s20, %s52_s20 }
  0x3e   :  { %p1546_p13 = scmp.ne.s32.totalorder %s52_s20, %s1545_s28  ;;  %p1551_p1 = scmp.lt.s32.totalorder %s1545_s28, %s1545_s28 }
  0x40   :  { %p1552_p2 = por %p1551_p1, %p1550_p0 }
  0x42   :  { %p1553_p3 = pnand %p1552_p2, %p1546_p13 }
  0x44   :  { %1556 = shalt.err (!%p1553_p3)
}
  0x45   :  { %s1663_s0 = smov 128   ;;  %s1664_s15 = smov 8  }
  0x46   :  { %57 = dma.hbm_to_vmem [thread:$0]  %s1862_s2, 256, %s52_s20, [#allocation6], %s1663_s0, %s1663_s0, %s1664_s15  }
  0x47   :  { %s1665_s12 = smov [#allocation10]   ;;  %s1557_s5 = scalar_lea.hbm %s1867_s7, 2048 }
  0x48   :  { %s81_s14 = sshll.u32 %s1665_s12, 4  ;;  %p1558_p4 = scmp.ne.s32.totalorder %s1867_s7, %s1557_s5  ;;  %s82_s14 = int_to_ptr.vmem [resolvable:$true] %s81_s14 }
  0x49   :  { %p1561_p5 = scmp.lt.u32.totalorder %s1557_s5, %s1867_s7 }
  0x4b   :  { %p1563_p6 = pnand %p1561_p5, %p1558_p4 }
  0x4d   :  { %1566 = shalt.err (!%p1563_p6)
}
  0x4e   :  { %s1567_s23 = scalar_lea.vmem %s82_s14, 2048  ;;  %p1572_p8 = scmp.lt.s32.totalorder %s82_s14, %s82_s14 }
  0x4f   :  { %p1568_p7 = scmp.ne.s32.totalorder %s82_s14, %s1567_s23  ;;  %p1573_p9 = scmp.lt.s32.totalorder %s1567_s23, %s1567_s23 }
  0x51   :  { %p1574_p10 = por %p1573_p9, %p1572_p8 }
  0x53   :  { %p1575_p11 = pnand %p1574_p10, %p1568_p7 }
  0x55   :  { %1578 = shalt.err (!%p1575_p11)
}
  0x56   :  { %87 = dma.hbm_to_vmem [thread:$0]  %s1867_s7, 2048, %s82_s14, [#allocation9], %s1660_s18, %s1660_s18, %s1661_s24  }
  0x57   :  { %1645 = dma.done.wait [#allocation3], 128  }
  0x58   :  { %1646 = vsyncadd [#allocation3], 4294967168 }
  0x59   :  { %1647 = dma.done.wait [#allocation6], 1280  }
  0x5a   :  { %1648 = vsyncadd [#allocation6], 4294966016 }
  0x5b   :  { %1649 = dma.done.wait [#allocation9], 10240  }
  0x5c   :  { %1650 = vsyncadd [#allocation9], 4294957056  ;;  %v1666_v0 = vmov 0.0   ;;  %vm1667_vm0 = vmmov 0   ;;  %v1384_v1 = vld [vmem:[%s1863_s3] sm:$0xff]   ;;  %v1385_v2 = vld [vmem:[#allocation8 + $0x40] sm:$0xff]  }
  0x5d   :  { %1362 = vmatprep.subr.bf16.mxu0 %v1666_v0  ;;  %1364 = vmatprep.mubr.msk.bf16.mxu0 %vm1667_vm0, %v1666_v0  ;;  %v1386_v3 = vld [vmem:[#allocation8] sm:$0xff]   ;;  %vm298_vm1 = vcmask 130048   ;;  %v1388_v5 = vld [vmem:[#allocation2] sm:$0xff]   ;;  %v1393_v10 = vld [vmem:[#allocation8 + $0x50] sm:$0xff]   ;;  %s1668_s18 = smov [#allocation11]  }
  0x5e   :  { %1363 = vmatpush3.bf16.msra.mxu0 %v1384_v1  ;;  %1252 = vmatprep.subr.bf16.mxu1 %v1385_v2  ;;  %v1387_v4 = vld [vmem:[#allocation8 + $0xc0] sm:$0xff]   ;;  %v1389_v6 = vld [vmem:[#allocation8 + $0x48] sm:$0xff]   ;;  %v1395_v12 = vld [vmem:[#allocation8 + $0x10] sm:$0xff]   ;;  %s1109_s24 = sshll.u32 %s1668_s18, 4  ;;  %s1110_s24 = int_to_ptr.vmem [resolvable:$true] %s1109_s24 }
  0x5f   :  { %1253 = vmatpush3.bf16.msra.mxu1 %v1386_v3  ;;  %1274 = vmatprep.subr.bf16.mxu0 %v1387_v4  ;;  %v1390_v7 = vld [vmem:[#allocation8 + $0x80] sm:$0xff]   ;;  %v1391_v8 = vld [vmem:[#allocation8 + $0x8] sm:$0xff]   ;;  %v1396_v13 = vld [vmem:[#allocation8 + $0xd0] sm:$0xff]   ;;  %s1579_s26 = scalar_lea.vmem %s1110_s24, 256  ;;  %p1584_p13 = scmp.lt.s32.totalorder %s1110_s24, %s1110_s24 }
  0x60   :  { %1254 = vmatprep.subr.bf16.mxu1 %v1389_v6  ;;  %v1392_v9 = vld [vmem:[#allocation8 + $0xc8] sm:$0xff]   ;;  %v1397_v14 = vld [vmem:[#allocation8 + $0x58] sm:$0xff]   ;;  %v1398_v15 = vld [vmem:[#allocation8 + $0x90] sm:$0xff]   ;;  %p1580_p12 = scmp.ne.s32.totalorder %s1110_s24, %s1579_s26  ;;  %p1585_p0 = scmp.lt.s32.totalorder %s1579_s26, %s1579_s26 }
  0x61   :  { %1365 = vmatmul.mubr.msk.bf16.vlgmr.msra.gmra.mrb[0].mxu0 %vm298_vm1, %v1388_v5  ;;  %v1394_v11 = vld [vmem:[#allocation8 + $0x88] sm:$0xff]   ;;  %v1399_v16 = vld [vmem:[#allocation8 + $0x18] sm:$0xff]   ;;  %v1401_v18 = vld [vmem:[#allocation8 + $0x60] sm:$0xff]  }
  0x62   :  { %1275 = vmatpush3.bf16.msra.mxu0 %v1390_v7  ;;  %v1400_v17 = vld [vmem:[#allocation8 + $0xd8] sm:$0xff]   ;;  %v1403_v20 = vld [vmem:[#allocation8 + $0x20] sm:$0xff]   ;;  %v1405_v22 = vld [vmem:[#allocation8 + $0x68] sm:$0xff]   ;;  %p1586_p1 = por %p1585_p0, %p1584_p13 }
  0x63   :  { %1255 = vmatpush3.bf16.msra.mxu1 %v1391_v8  ;;  %1276 = vmatprep.subr.bf16.mxu0 %v1392_v9  ;;  %v1402_v19 = vld [vmem:[#allocation8 + $0x98] sm:$0xff]   ;;  %v1404_v21 = vld [vmem:[#allocation8 + $0xe0] sm:$0xff]   ;;  %v1407_v24 = vld [vmem:[#allocation8 + $0x28] sm:$0xff]  }
  0x64   :  { %1256 = vmatprep.subr.bf16.mxu1 %v1393_v10  ;;  %v1406_v23 = vld [vmem:[#allocation8 + $0xa0] sm:$0xff]   ;;  %v1408_v25 = vld [vmem:[#allocation8 + $0xe8] sm:$0xff]   ;;  %v1409_v26 = vld [vmem:[#allocation8 + $0x70] sm:$0xff]   ;;  %p1587_p2 = pnand %p1586_p1, %p1580_p12 }
  0x65   :  { %v1410_v27 = vld [vmem:[#allocation8 + $0xa8] sm:$0xff]   ;;  %v1411_v28 = vld [vmem:[#allocation8 + $0x30] sm:$0xff]   ;;  %v1413_v30 = vld [vmem:[#allocation8 + $0x78] sm:$0xff]  }
  0x66   :  { %1277 = vmatpush3.bf16.msra.mxu0 %v1394_v11  ;;  %v1412_v29 = vld [vmem:[#allocation8 + $0xf0] sm:$0xff]   ;;  %v1415_v32 = vld [vmem:[#allocation8 + $0x38] sm:$0xff]   ;;  %v1418_v39 = vld [vmem:[#allocation8 + $0x140] sm:$0xff]  }
  0x67   :  { %1257 = vmatpush3.bf16.msra.mxu1 %v1395_v12  ;;  %1278 = vmatprep.subr.bf16.mxu0 %v1396_v13  ;;  %v1414_v31 = vld [vmem:[#allocation8 + $0xb0] sm:$0xff]   ;;  %v1416_v37 = vld [vmem:[#allocation8 + $0xf8] sm:$0xff]   ;;  %v1419_v40 = vld [vmem:[#allocation8 + $0x100] sm:$0xff]  }
  0x68   :  { %1258 = vmatprep.subr.bf16.mxu1 %v1397_v14  ;;  %v110_v33 = vld [vmem:[#allocation5] sm:$0xff]  ;;  %v1417_v38 = vld [vmem:[#allocation8 + $0xb8] sm:$0xff]   ;;  %v1420_v45 = vld [vmem:[#allocation8 + $0x1c0] sm:$0xff]  }
  0x69   :  { %v114_v34 = vld [vmem:[#allocation5 + $0x20] sm:$0xff]  ;;  %v111_v41 = vld [vmem:[#allocation5 + $0x8] sm:$0xff]  ;;  %v1421_v46 = vld [vmem:[#allocation8 + $0x148] sm:$0xff]  }
  0x6a   :  { %1279 = vmatpush3.bf16.msra.mxu0 %v1398_v15  ;;  %v1159_v35 = vcombine.low %v110_v33, %v114_v34  ;;  %v1160_v36 = vcombine.high %v110_v33, %v114_v34  ;;  %v115_v42 = vld [vmem:[#allocation5 + $0x28] sm:$0xff]  ;;  %v1422_v47 = vld [vmem:[#allocation8 + $0x180] sm:$0xff]   ;;  %v1423_v48 = vld [vmem:[#allocation8 + $0x108] sm:$0xff]  }
  0x6b   :  { %1259 = vmatpush3.bf16.msra.mxu1 %v1399_v16  ;;  %1280 = vmatprep.subr.bf16.mxu0 %v1400_v17  ;;  %v1161_v43 = vcombine.low %v111_v41, %v115_v42  ;;  %v1162_v44 = vcombine.high %v111_v41, %v115_v42  ;;  %v1424_v49 = vld [vmem:[#allocation8 + $0x1c8] sm:$0xff]   ;;  %v1425_v50 = vld [vmem:[#allocation8 + $0x150] sm:$0xff]   ;;  %v1429_v54 = vld [vmem:[#allocation8 + $0x158] sm:$0xff]  }
  0x6c   :  { %1260 = vmatprep.subr.bf16.mxu1 %v1401_v18  ;;  %810 = vmatprep.mubr.bf16.mxu1 %v1160_v36  ;;  %v1426_v51 = vld [vmem:[#allocation8 + $0x188] sm:$0xff]   ;;  %v1427_v52 = vld [vmem:[#allocation8 + $0x110] sm:$0xff]   ;;  %v1431_v56 = vld [vmem:[#allocation8 + $0x118] sm:$0xff]  }
  0x6d   :  { %851 = vmatprep.mubr.bf16.mxu0 %v1162_v44  ;;  %v1428_v53 = vld [vmem:[#allocation8 + $0x1d0] sm:$0xff]   ;;  %v1432_v57 = vld [vmem:[#allocation8 + $0x1d8] sm:$0xff]   ;;  %v1433_v58 = vld [vmem:[#allocation8 + $0x160] sm:$0xff]  }
  0x6e   :  { %1281 = vmatpush3.bf16.msra.mxu0 %v1402_v19  ;;  %v1430_v55 = vld [vmem:[#allocation8 + $0x190] sm:$0xff]   ;;  %v1434_v59 = vld [vmem:[#allocation8 + $0x198] sm:$0xff]   ;;  %v1435_v60 = vld [vmem:[#allocation8 + $0x120] sm:$0xff]  }
  0x6f   :  { %1261 = vmatpush3.bf16.msra.mxu1 %v1403_v20  ;;  %1282 = vmatprep.subr.bf16.mxu0 %v1404_v21  ;;  %v1436_v61 = vld [vmem:[#allocation8 + $0x1e0] sm:$0xff]   ;;  %v1437_v62 = vld [vmem:[#allocation8 + $0x168] sm:$0xff]   ;;  %v1441_v2 = vld [vmem:[#allocation8 + $0x170] sm:$0xff]  }
  0x70   :  { %1262 = vmatprep.subr.bf16.mxu1 %v1405_v22  ;;  %v1438_v63 = vld [vmem:[#allocation8 + $0x1a0] sm:$0xff]   ;;  %v1439_v0 = vld [vmem:[#allocation8 + $0x128] sm:$0xff]   ;;  %v1443_v4 = vld [vmem:[#allocation8 + $0x130] sm:$0xff]  }
  0x71   :  { %v1440_v1 = vld [vmem:[#allocation8 + $0x1e8] sm:$0xff]   ;;  %v1444_v5 = vld [vmem:[#allocation8 + $0x1f0] sm:$0xff]   ;;  %v1445_v6 = vld [vmem:[#allocation8 + $0x178] sm:$0xff]  }
  0x72   :  { %1283 = vmatpush3.bf16.msra.mxu0 %v1406_v23  ;;  %v1442_v3 = vld [vmem:[#allocation8 + $0x1a8] sm:$0xff]   ;;  %v1446_v7 = vld [vmem:[#allocation8 + $0x1b0] sm:$0xff]   ;;  %v1447_v8 = vld [vmem:[#allocation8 + $0x138] sm:$0xff]  }
  0x73   :  { %1263 = vmatpush3.bf16.msra.mxu1 %v1407_v24  ;;  %1284 = vmatprep.subr.bf16.mxu0 %v1408_v25  ;;  %v112_v9 = vld [vmem:[#allocation5 + $0x10] sm:$0xff]  ;;  %v1448_v13 = vld [vmem:[#allocation8 + $0x1f8] sm:$0xff]   ;;  %v113_v17 = vld [vmem:[#allocation5 + $0x18] sm:$0xff] }
  0x74   :  { %1264 = vmatprep.subr.bf16.mxu1 %v1409_v26  ;;  %v116_v10 = vld [vmem:[#allocation5 + $0x30] sm:$0xff]  ;;  %v1449_v14 = vld [vmem:[#allocation8 + $0x1b8] sm:$0xff]   ;;  %v117_v18 = vld [vmem:[#allocation5 + $0x38] sm:$0xff] }
  0x75   :  { %v1163_v11 = vcombine.low %v112_v9, %v116_v10  ;;  %v1164_v12 = vcombine.high %v112_v9, %v116_v10  ;;  %v1450_v15 = vld [vmem:[#allocation10 + $0x40] sm:$0xff]   ;;  %v1165_v19 = vcombine.low %v113_v17, %v117_v18  ;;  %v1166_v20 = vcombine.high %v113_v17, %v117_v18  ;;  %v1452_v21 = vld [vmem:[#allocation10 + $0x48] sm:$0xff]   ;;  %v1454_v23 = vld [vmem:[#allocation10 + $0x50] sm:$0xff]  }
  0x76   :  { %1285 = vmatpush3.bf16.msra.mxu0 %v1410_v27  ;;  %v1451_v16 = vld [vmem:[#allocation10] sm:$0xff]   ;;  %v1453_v22 = vld [vmem:[#allocation10 + $0x8] sm:$0xff]   ;;  %v1455_v24 = vld [vmem:[#allocation10 + $0x10] sm:$0xff]  }
  0x77   :  { %1265 = vmatpush3.bf16.msra.mxu1 %v1411_v28  ;;  %1286 = vmatprep.subr.bf16.mxu0 %v1412_v29  ;;  %v1456_v25 = vld [vmem:[#allocation10 + $0x58] sm:$0xff]   ;;  %v1458_v27 = vld [vmem:[#allocation10 + $0x60] sm:$0xff]   ;;  %v1460_v29 = vld [vmem:[#allocation10 + $0x68] sm:$0xff]  }
  0x78   :  { %1266 = vmatprep.subr.bf16.mxu1 %v1413_v30  ;;  %v1457_v26 = vld [vmem:[#allocation10 + $0x18] sm:$0xff]   ;;  %v1459_v28 = vld [vmem:[#allocation10 + $0x20] sm:$0xff]   ;;  %v1463_v33 = vld [vmem:[#allocation10 + $0x30] sm:$0xff]  }
  0x79   :  { %v1468_v30 = vld [vmem:[#allocation7 + $0x4] ss:$8 sps:$4 sm:$0xff]   ;;  %v1466_v36 = vld [vmem:[#allocation7] ss:$8 sps:$4 sm:$0xff]  }
  0x7a   :  { %1287 = vmatpush3.bf16.msra.mxu0 %v1414_v31  ;;  %v1461_v31 = vld [vmem:[#allocation10 + $0x28] sm:$0xff]   ;;  %v1464_v34 = vld [vmem:[#allocation10 + $0x78] sm:$0xff]  }
  0x7b   :  { %1267 = vmatpush3.bf16.msra.mxu1 %v1415_v32  ;;  %1288 = vmatprep.subr.bf16.mxu0 %v1416_v37  ;;  %v1462_v32 = vld [vmem:[#allocation10 + $0x70] sm:$0xff]   ;;  %v1154_v37 = vld [vmem:[%s1864_s4] ss:$0 sm:$0xff] }
  0x7c   :  { %1296 = vmatprep.subr.bf16.mxu1 %v1418_v39 }
  0x7e   :  { %811 = vmatmul.mubr.bf16.vlgmr.msra.gmra.mrb[0].mxu1 %v1159_v35  ;;  %1289 = vmatpush3.bf16.msra.mxu0 %v1417_v38  ;;  %v1465_v35 = vld [vmem:[#allocation10 + $0x38] sm:$0xff]  }
  0x7f   :  { %1297 = vmatpush3.bf16.msra.mxu1 %v1419_v40  ;;  %1318 = vmatprep.subr.bf16.mxu0 %v1420_v45 }
  0x80   :  { %1298 = vmatprep.subr.bf16.mxu1 %v1421_v46  ;;  %892 = vmatprep.mubr.bf16.mxu1 %v1164_v12 }
  0x81   :  { %852 = vmatmul.mubr.bf16.vlgmr.msra.gmra.mrb[4].mxu0 %v1161_v43 }
  0x82   :  { %1319 = vmatpush3.bf16.msra.mxu0 %v1422_v47  ;;  %933 = vmatprep.mubr.bf16.mxu0 %v1166_v20 }
  0x83   :  { %1299 = vmatpush3.bf16.msra.mxu1 %v1423_v48  ;;  %1320 = vmatprep.subr.bf16.mxu0 %v1424_v49 }
  0x84   :  { %1300 = vmatprep.subr.bf16.mxu1 %v1425_v50 }
  0x86   :  { %1321 = vmatpush3.bf16.msra.mxu0 %v1426_v51 }
  0x87   :  { %1301 = vmatpush3.bf16.msra.mxu1 %v1427_v52  ;;  %1322 = vmatprep.subr.bf16.mxu0 %v1428_v53 }
  0x88   :  { %1302 = vmatprep.subr.bf16.mxu1 %v1429_v54 }
  0x8a   :  { %1323 = vmatpush3.bf16.msra.mxu0 %v1430_v55 }
  0x8b   :  { %1303 = vmatpush3.bf16.msra.mxu1 %v1431_v56  ;;  %1324 = vmatprep.subr.bf16.mxu0 %v1432_v57 }
  0x8c   :  { %1304 = vmatprep.subr.bf16.mxu1 %v1433_v58 }
  0x8e   :  { %1325 = vmatpush3.bf16.msra.mxu0 %v1434_v59 }
  0x8f   :  { %1305 = vmatpush3.bf16.msra.mxu1 %v1435_v60  ;;  %1326 = vmatprep.subr.bf16.mxu0 %v1436_v61 }
  0x90   :  { %1306 = vmatprep.subr.bf16.mxu1 %v1437_v62 }
  0x92   :  { %1327 = vmatpush3.bf16.msra.mxu0 %v1438_v63 }
  0x93   :  { %1307 = vmatpush3.bf16.msra.mxu1 %v1439_v0  ;;  %1328 = vmatprep.subr.bf16.mxu0 %v1440_v1 }
  0x94   :  { %1308 = vmatprep.subr.bf16.mxu1 %v1441_v2 }
  0x96   :  { %1329 = vmatpush3.bf16.msra.mxu0 %v1442_v3 }
  0x97   :  { %1309 = vmatpush3.bf16.msra.mxu1 %v1443_v4  ;;  %1330 = vmatprep.subr.bf16.mxu0 %v1444_v5 }
  0x98   :  { %1310 = vmatprep.subr.bf16.mxu1 %v1445_v6 }
  0x9a   :  { %1331 = vmatpush3.bf16.msra.mxu0 %v1446_v7 }
  0x9b   :  { %1311 = vmatpush3.bf16.msra.mxu1 %v1447_v8  ;;  %1332 = vmatprep.subr.bf16.mxu0 %v1448_v13 }
  0x9c   :  { %1340 = vmatprep.subr.bf16.mxu1 %v1450_v15 }
  0x9e   :  { %893 = vmatmul.mubr.bf16.vlgmr.msra.gmra.mrb[4].mxu1 %v1163_v11  ;;  %1333 = vmatpush3.bf16.msra.mxu0 %v1449_v14 }
  0x9f   :  { %1341 = vmatpush3.bf16.msra.mxu1 %v1451_v16  ;;  %1091 = vmatprep.mubr.bf16.mxu1 %v1468_v30 }
  0xa0   :  { %1342 = vmatprep.subr.bf16.mxu1 %v1452_v21 }
  0xa1   :  { %934 = vmatmul.mubr.bf16.vlgmr.msra.gmra.mrb[8].mxu0 %v1165_v19 }
  0xa3   :  { %1343 = vmatpush3.bf16.msra.mxu1 %v1453_v22 }
  0xa4   :  { %1344 = vmatprep.subr.bf16.mxu1 %v1454_v23 }
  0xa7   :  { %1345 = vmatpush3.bf16.msra.mxu1 %v1455_v24 }
  0xa8   :  { %1346 = vmatprep.subr.bf16.mxu1 %v1456_v25 }
  0xab   :  { %1347 = vmatpush3.bf16.msra.mxu1 %v1457_v26 }
  0xac   :  { %1348 = vmatprep.subr.bf16.mxu1 %v1458_v27 }
  0xaf   :  { %1349 = vmatpush3.bf16.msra.mxu1 %v1459_v28 }
  0xb0   :  { %1350 = vmatprep.subr.bf16.mxu1 %v1460_v29 }
  0xb3   :  { %1351 = vmatpush3.bf16.msra.mxu1 %v1461_v31 }
  0xb4   :  { %1352 = vmatprep.subr.bf16.mxu1 %v1462_v32 }
  0xb7   :  { %1353 = vmatpush3.bf16.msra.mxu1 %v1463_v33 }
  0xb8   :  { %1354 = vmatprep.subr.bf16.mxu1 %v1464_v34 }
  0xbb   :  { %1355 = vmatpush3.bf16.msra.mxu1 %v1465_v35 }
  0xbe   :  { %1092 = vmatmul.mubr.bf16.vlgmr.msra.gmra.mrb[8].mxu1 %v1466_v36 }
 0x134   :  { %v336_v38 = vpop.f32.mrb[0].mxu0 }
 0x135   :  { %v337_v39 = vadd.f32 %v1154_v37, %v336_v38  ;;  %v1366_v40 = vpop.f32.mrb[1].mxu0 }
 0x136   :  { %v339_v41 = vpop.f32.mrb[2].mxu0 }
 0x137   :  { %v343_v42 = vmax.f32 %v337_v39, 0.0  ;;  %v340_v43 = vadd.f32 %v1154_v37, %v339_v41  ;;  %v1367_v44 = vpop.f32.mrb[3].mxu0 }
 0x139   :  { %345 = vst [vmem:[#allocation11] sm:$0xff] %v343_v42  ;;  %v344_v45 = vmax.f32 %v340_v43, 0.0 }
 0x13b   :  { %346 = vst [vmem:[#allocation11 + $0x8] sm:$0xff] %v344_v45 }
 0x13c   :  { %1590 = shalt.err (!%p1587_p2)
}
 0x13d   :  { %s1591_s28 = scalar_lea.hbm %s1869_s9, 256 }
 0x13e   :  { %p1592_p3 = scmp.ne.s32.totalorder %s1869_s9, %s1591_s28  ;;  %p1595_p4 = scmp.lt.u32.totalorder %s1591_s28, %s1869_s9 }
 0x140   :  { %p1597_p5 = pnand %p1595_p4, %p1592_p3 }
 0x142   :  { %1600 = shalt.err (!%p1597_p5)
}
 0x143   :  { %1115 = dma.vmem_to_hbm [thread:$0]  %s1110_s24, 256, %s1869_s9, [#allocation4], %s1663_s0, %s1663_s0, %s1664_s15  }
 0x144   :  { %v1158_v48 = vld [vmem:[%s1866_s6] ss:$0 sm:$0xff]  ;;  %s1669_s6 = smov [#allocation12]  }
 0x145   :  { %s1121_s9 = sshll.u32 %s1669_s6, 4  ;;  %s1122_s9 = int_to_ptr.vmem [resolvable:$true] %s1121_s9 }
 0x146   :  { %s1601_s19 = scalar_lea.vmem %s1122_s9, 256  ;;  %p1606_p7 = scmp.lt.s32.totalorder %s1122_s9, %s1122_s9 }
 0x147   :  { %p1602_p6 = scmp.ne.s32.totalorder %s1122_s9, %s1601_s19  ;;  %p1607_p8 = scmp.lt.s32.totalorder %s1601_s19, %s1601_s19 }
 0x149   :  { %p1608_p9 = por %p1607_p8, %p1606_p7 }
 0x14b   :  { %p1609_p10 = pnand %p1608_p9, %p1602_p6 }
 0x151   :  { %v1268_v46 = vpop.f32.mrb[0].mxu1 }
 0x152   :  { %v1269_v47 = vpop.f32.mrb[1].mxu1 }
 0x153   :  { %v1270_v49 = vadd.f32 %v1269_v47, %v1268_v46  ;;  %v1271_v50 = vpop.f32.mrb[2].mxu1 }
 0x154   :  { %v1272_v51 = vpop.f32.mrb[3].mxu1  ;;  %v1290_v54 = vpop.f32.mrb[4].mxu0 }
 0x155   :  { %v1273_v52 = vadd.f32 %v1272_v51, %v1271_v50  ;;  %v813_v53 = vadd.f32 %v1270_v49, %v1158_v48  ;;  %v1291_v55 = vpop.f32.mrb[5].mxu0 }
 0x156   :  { %v1292_v57 = vadd.f32 %v1291_v55, %v1290_v54  ;;  %v1293_v58 = vpop.f32.mrb[6].mxu0 }
 0x157   :  { %v816_v56 = vadd.f32 %v1273_v52, %v1158_v48  ;;  %v1294_v59 = vpop.f32.mrb[7].mxu0 }
 0x158   :  { %v854_v60 = vadd.f32 %v1292_v57, %v813_v53  ;;  %v1295_v61 = vadd.f32 %v1294_v59, %v1293_v58 }
 0x15a   :  { %v857_v62 = vadd.f32 %v1295_v61, %v816_v56 }
 0x171   :  { %v1312_v63 = vpop.f32.mrb[4].mxu1 }
 0x172   :  { %v1313_v0 = vpop.f32.mrb[5].mxu1 }
 0x173   :  { %v1314_v1 = vadd.f32 %v1313_v0, %v1312_v63  ;;  %v1315_v2 = vpop.f32.mrb[6].mxu1 }
 0x174   :  { %v1316_v3 = vpop.f32.mrb[7].mxu1  ;;  %v1334_v6 = vpop.f32.mrb[8].mxu0 }
 0x175   :  { %v895_v4 = vadd.f32 %v1314_v1, %v854_v60  ;;  %v1317_v5 = vadd.f32 %v1316_v3, %v1315_v2  ;;  %v1335_v7 = vpop.f32.mrb[9].mxu0 }
 0x176   :  { %v1336_v9 = vadd.f32 %v1335_v7, %v1334_v6  ;;  %v1337_v10 = vpop.f32.mrb[10].mxu0 }
 0x177   :  { %v898_v8 = vadd.f32 %v1317_v5, %v857_v62  ;;  %v1338_v11 = vpop.f32.mrb[11].mxu0 }
 0x178   :  { %v936_v12 = vadd.f32 %v1336_v9, %v895_v4  ;;  %v1339_v13 = vadd.f32 %v1338_v11, %v1337_v10 }
 0x17a   :  { %v942_v14 = vmax.f32 %v936_v12, 0.0  ;;  %v939_v15 = vadd.f32 %v1339_v13, %v898_v8 }
 0x17c   :  { %944 = vst [vmem:[#allocation12] sm:$0xff] %v942_v14  ;;  %v943_v16 = vmax.f32 %v939_v15, 0.0 }
 0x17e   :  { %945 = vst [vmem:[#allocation12 + $0x8] sm:$0xff] %v943_v16 }
 0x17f   :  { %1612 = shalt.err (!%p1609_p10)
}
 0x180   :  { %s1613_s23 = scalar_lea.hbm %s1870_s10, 256 }
 0x181   :  { %p1614_p11 = scmp.ne.s32.totalorder %s1870_s10, %s1613_s23  ;;  %p1617_p12 = scmp.lt.u32.totalorder %s1613_s23, %s1870_s10 }
 0x183   :  { %p1619_p13 = pnand %p1617_p12, %p1614_p11 }
 0x185   :  { %1622 = shalt.err (!%p1619_p13)
}
 0x186   :  { %1127 = dma.vmem_to_hbm [thread:$0]  %s1122_s9, 256, %s1870_s10, [#allocation13], %s1663_s0, %s1663_s0, %s1664_s15  }
 0x187   :  { %v1231_v18 = vld [vmem:[%s1868_s8] ss:$0 sm:$0xff]  ;;  %s1670_s26 = smov [#allocation14]  }
 0x188   :  { %s1133_s4 = sshll.u32 %s1670_s26, 4  ;;  %s1134_s4 = int_to_ptr.vmem [resolvable:$true] %s1133_s4 }
 0x189   :  { %s1623_s10 = scalar_lea.vmem %s1134_s4, 256  ;;  %p1628_p1 = scmp.lt.s32.totalorder %s1134_s4, %s1134_s4 }
 0x18a   :  { %p1624_p0 = scmp.ne.s32.totalorder %s1134_s4, %s1623_s10  ;;  %p1629_p2 = scmp.lt.s32.totalorder %s1623_s10, %s1623_s10 }
 0x18c   :  { %p1630_p3 = por %p1629_p2, %p1628_p1 }
 0x18e   :  { %p1631_p4 = pnand %p1630_p3, %p1624_p0 }
 0x191   :  { %v1356_v17 = vpop.f32.mrb[8].mxu1 }
 0x192   :  { %v1357_v19 = vpop.f32.mrb[9].mxu1 }
 0x193   :  { %v1358_v20 = vadd.f32 %v1357_v19, %v1356_v17  ;;  %v1359_v21 = vpop.f32.mrb[10].mxu1 }
 0x194   :  { %v1360_v22 = vpop.f32.mrb[11].mxu1 }
 0x195   :  { %v1094_v23 = vadd.f32 %v1358_v20, %v1231_v18  ;;  %v1361_v24 = vadd.f32 %v1360_v22, %v1359_v21 }
 0x197   :  { %v1100_v25 = vmax.f32 %v1094_v23, 0.0  ;;  %v1097_v26 = vadd.f32 %v1361_v24, %v1231_v18 }
 0x199   :  { %1102 = vst [vmem:[#allocation14] sm:$0xff] %v1100_v25  ;;  %v1101_v27 = vmax.f32 %v1097_v26, 0.0 }
 0x19b   :  { %1103 = vst [vmem:[#allocation14 + $0x8] sm:$0xff] %v1101_v27 }
 0x19c   :  { %1634 = shalt.err (!%p1631_p4)
}
 0x19d   :  { %s1635_s28 = scalar_lea.hbm %s1871_s11, 256 }
 0x19e   :  { %p1636_p5 = scmp.ne.s32.totalorder %s1871_s11, %s1635_s28  ;;  %p1639_p6 = scmp.lt.u32.totalorder %s1635_s28, %s1871_s11 }
 0x1a0   :  { %p1641_p7 = pnand %p1639_p6, %p1636_p5 }
 0x1a2   :  { %1644 = shalt.err (!%p1641_p7)
}
 0x1a3   :  { %1139 = dma.vmem_to_hbm [thread:$0]  %s1134_s4, 256, %s1871_s11, [#allocation13], %s1663_s0, %s1663_s0, %s1664_s15  }
 0x1a4   :  { %1651 = dma.done.wait [#allocation4], 256  }
 0x1a5   :  { %1652 = vsyncadd [#allocation4], 4294967040 }
 0x1a6   :  { %1653 = dma.done.wait [#allocation13], 512  }
 0x1a7   :  { %1654 = vsyncadd [#allocation13], 4294966784 }
 0x1a8   :  { %1149 = vsyncpa [#allocation3], 1 }
 0x1a9   :  { %1150 = vsyncpa [#allocation6], 1 }
 0x1aa   :  { %1151 = vsyncpa [#allocation9], 1 }
 0x1ab   :  { %1152 = vsyncpa [#allocation4], 1 }
 0x1ac   :  { %1153 = vsyncpa [#allocation13], 1 }

</bundles_post_ra>
